<compile_context>
chip_gen: v6e
topology: v6e:2x2x1
jax: 0.10.0
libtpu: 0.0.40
codegen_flags: <defaults>
</compile_context>

<pallas_src>
import numpy as np

import jax
import jax.numpy as jnp
from jax.experimental import pallas as pl
from jax.experimental.pallas import tpu as pltpu

_LANE = 128


# ---------------------------------------------------------------------------
# Kernel
# ---------------------------------------------------------------------------
def _pos_add_kernel(x_ref, w_ref, o_ref):
    # x_ref: (TR, LW) native x dtype; w_ref: (TR, LW) promoted compute dtype;
    # o_ref: (TR, LW) output dtype (may be narrower than compute when the
    # caller overrides out_dtype).  Batch dim is squeezed via the BlockSpec;
    # broadcast over batch is expressed purely through the weight index_map.
    w = w_ref[...]
    acc = x_ref[...].astype(w.dtype) + w
    o_ref[...] = acc.astype(o_ref.dtype)


# ---------------------------------------------------------------------------
# Layout / tiling helpers
# ---------------------------------------------------------------------------
def _choose_layout(n, max_lanes=32768):
    """Return (rows, lanes, n_pad): n_pad = rows * lanes >= n, lanes a multiple
    of 128 (<= max_lanes).  Prefers an exact factorization of n; otherwise pads
    n up to the next multiple of 128 so every store stays lane-dense."""
    def best_lanes(m):
        k = min(m // _LANE, max_lanes // _LANE)
        while k >= 1:
            lanes = _LANE * k
            if m % lanes == 0:
                return lanes
            k -= 1
        return None

    lanes = best_lanes(n)
    if lanes is not None:
        return n // lanes, lanes, n
    n_pad = ((n + _LANE - 1) // _LANE) * _LANE
    lanes = best_lanes(n_pad)            # always succeeds: n_pad % 128 == 0
    return n_pad // lanes, lanes, n_pad


def _default_max_block_bytes():
    """~4 MiB blocks on v6e/v7x (32 MiB default scoped VMEM; 2x(x+w+out) ~24 MiB
    fits), ~2 MiB on v5e / unknown chips (16 MiB default scoped VMEM)."""
    try:
        kind = jax.devices()[0].device_kind.lower()
    except Exception:
        kind = ""
    if ("v6" in kind) or ("v7" in kind) or ("7x" in kind):
        return 4 * 1024 * 1024
    return 2 * 1024 * 1024


def _broadcast_add_pallas(x_flat, w_flat, out_dtype, *, donate_x=False,
                          max_lanes=32768, max_block_bytes=None):
    """x_flat: (B, N) native dtype; w_flat: (N,) already cast to the promoted
    compute dtype.  Returns (B, N) in out_dtype computing x + w[None, :]."""
    B, N = x_flat.shape
    R, LW, n_pad = _choose_layout(N, max_lanes=max_lanes)
    if n_pad != N:
        # Lane-dense everywhere: pad the tail to a 128-multiple instead of
        # masked vst / one huge unsplittable block.
        # TODO(synk): fold the pad/unpad of x into the kernel itself to avoid
        #             the extra x round trip for large non-128-divisible N.
        x_flat = jnp.pad(x_flat, ((0, 0), (0, n_pad - N)))
        w_flat = jnp.pad(w_flat, (0, n_pad - N))
    x3 = x_flat.reshape(B, R, LW)        # row-major reshape: free (bitcast)
    w2 = w_flat.reshape(R, LW)

    if max_block_bytes is None:
        max_block_bytes = _default_max_block_bytes()
    out_itemsize = np.dtype(out_dtype).itemsize
    x_itemsize = np.dtype(x_flat.dtype).itemsize
    # Sublane granule of the narrowest dtype in flight: 8 f32 / 16 bf16 / 32 i8.
    granule = 32 // min(x_itemsize, out_itemsize)

    rows_per_block = max(1, max_block_bytes // (LW * out_itemsize))
    if R <= rows_per_block:
        tr = R                                   # full extent (valid even < 8)
    else:
        tr = max(granule, (rows_per_block // granule) * granule)
        tr = min(tr, R)
    grid_r = pl.cdiv(R, tr)

    # Donation is opt-in: aliasing a still-live x makes XLA insert a defensive
    # full copy (costs more than it saves for this mem-bound kernel).
    aliases = {0: 0} if (donate_x and x_flat.dtype == np.dtype(out_dtype)) else {}

    if grid_r == 1:
        # Keep the leading (only) parallel axis splittable across v7x's 2 TCs.
        grid = (B,)
        in_specs = [
            pl.BlockSpec((None, tr, LW), lambda b: (b, 0, 0)),   # x tile
            pl.BlockSpec((tr, LW), lambda b: (0, 0)),            # weight: resident
        ]
        out_specs = pl.BlockSpec((None, tr, LW), lambda b: (b, 0, 0))
        dims = ("parallel",)
    else:
        # Batch innermost: weight block index constant across consecutive steps
        # -> one DMA per row tile; leading axis (>=2) splittable across TCs.
        grid = (grid_r, B)
        in_specs = [
            pl.BlockSpec((None, tr, LW), lambda r, b: (b, r, 0)),
            pl.BlockSpec((tr, LW), lambda r, b: (r, 0)),
        ]
        out_specs = pl.BlockSpec((None, tr, LW), lambda r, b: (b, r, 0))
        dims = ("parallel", "parallel")

    out = pl.pallas_call(
        _pos_add_kernel,
        out_shape=jax.ShapeDtypeStruct((B, R, LW), out_dtype),
        grid_spec=pltpu.PrefetchScalarGridSpec(
            num_scalar_prefetch=0,
            grid=grid,
            in_specs=in_specs,
            out_specs=out_specs,
        ),
        compiler_params=pltpu.CompilerParams(dimension_semantics=dims),
        input_output_aliases=aliases,
    )(x3, w2)

    out = out.reshape(B, n_pad)
    if n_pad != N:
        out = out[:, :N]
    return out


# ---------------------------------------------------------------------------
# Wrappers (forward semantics of PositionEmbeding)
# ---------------------------------------------------------------------------
def position_embedding_3d(x, weight, start=None, *, out_dtype=None, donate_x=False):
    """x: (B, L, C); weight: (S, C) with S >= start + L."""
    B, L, C = x.shape
    S, Cw = weight.shape
    assert Cw == C
    if start is None:
        start = 0
    compute_dtype = jnp.promote_types(x.dtype, weight.dtype)
    if out_dtype is None:
        out_dtype = compute_dtype

    if start == 0 and S == L:
        w = weight                                   # slice is a no-op: skip it
    else:
        # TODO(synk): fuse the slice into the weight BlockSpec via scalar
        #             prefetch instead of a separate XLA dynamic_slice dispatch.
        w = jax.lax.dynamic_slice(weight, (start, 0), (L, C))
    w = w.astype(compute_dtype).reshape(L * C)       # cast once, outside kernel

    out = _broadcast_add_pallas(x.reshape(B, L * C), w, out_dtype, donate_x=donate_x)
    return out.reshape(B, L, C)


def position_embedding_4d(x, weight, start=None, *, out_dtype=None, donate_x=False):
    """x: (B, C, H, W) NCHW; weight: (C, Hm, Wm) with Hm >= hs+H, Wm >= ws+W."""
    B, C, H, W = x.shape
    Cw, Hm, Wm = weight.shape
    assert Cw == C
    if start is None:
        start = (0, 0)
    hs, ws = start
    compute_dtype = jnp.promote_types(x.dtype, weight.dtype)
    if out_dtype is None:
        out_dtype = compute_dtype

    if (hs, ws) == (0, 0) and (Hm, Wm) == (H, W):
        w = weight                                   # slice is a no-op: skip it
    else:
        w = jax.lax.dynamic_slice(weight, (0, hs, ws), (C, H, W))
    w = w.astype(compute_dtype).reshape(C * H * W)

    out = _broadcast_add_pallas(x.reshape(B, C * H * W), w, out_dtype, donate_x=donate_x)
    return out.reshape(B, C, H, W)


# ---------------------------------------------------------------------------
# Parameter init: trunc_normal_(mean=0, std=0.02, a=mean-2*std, b=mean+2*std)
# ---------------------------------------------------------------------------
def trunc_normal(key, shape, mean=0.0, std=0.02):
    return mean + std * jax.random.truncated_normal(key, -2.0, 2.0, shape, jnp.float32)


if __name__ == "__main__":
    key = jax.random.PRNGKey(0)
    k_w3, k_x3, k_w4, k_x4, k_x5, k_w5 = jax.random.split(key, 6)

    # ---- 3D: weight (max_len, C), input (B, L, C), nonzero start ------------
    B, L, C, max_len = 2, 8, 32, 16
    weight_3d = trunc_normal(k_w3, (max_len, C))               # (S, C)
    x3 = jax.random.normal(k_x3, (B, L, C), jnp.float32)
    start = 3
    out3 = jax.block_until_ready(position_embedding_3d(x3, weight_3d, start=start))
    ref3 = x3 + weight_3d[start:start + L][None]
    assert out3.shape == ref3.shape and jnp.allclose(out3, ref3, atol=1e-6), "3D mismatch"

    # ---- 3D: full-length weight, start=0 (slice-free fast path) -------------
    x3f = jax.random.normal(jax.random.PRNGKey(7), (B, max_len, C), jnp.float32)
    out3f = jax.block_until_ready(position_embedding_3d(x3f, weight_3d))
    ref3f = x3f + weight_3d[None]
    assert jnp.allclose(out3f, ref3f, atol=1e-6), "3D (start=0) mismatch"

    # ---- 4D NCHW: weight (C, Hm, Wm), input (B, C, H, W), nonzero start -----
    Bi, Ci, Hi, Wi, Hm, Wm = 2, 4, 16, 16, 24, 24
    weight_4d = trunc_normal(k_w4, (Ci, Hm, Wm))
    x4 = jax.random.normal(k_x4, (Bi, Ci, Hi, Wi), jnp.float32)
    hs, ws = 2, 5
    out4 = jax.block_until_ready(position_embedding_4d(x4, weight_4d, start=(hs, ws)))
    ref4 = x4 + weight_4d[:, hs:hs + Hi, ws:ws + Wi][None]
    assert jnp.allclose(out4, ref4, atol=1e-6), "4D mismatch"

    # ---- mixed dtype: bf16 activations + fp32 weight -> fp32 (torch promotion)
    x4b = x4.astype(jnp.bfloat16)
    out4b = jax.block_until_ready(position_embedding_4d(x4b, weight_4d, start=(hs, ws)))
    ref4b = x4b.astype(jnp.float32) + weight_4d[:, hs:hs + Hi, ws:ws + Wi][None]
    assert out4b.dtype == jnp.float32, "dtype promotion mismatch"
    assert jnp.allclose(out4b, ref4b, atol=1e-6), "bf16/f32 mismatch"

    # ---- opt-in out_dtype override: bf16 out, fp32 accumulate in-kernel -----
    out4o = jax.block_until_ready(
        position_embedding_4d(x4b, weight_4d, start=(hs, ws), out_dtype=jnp.bfloat16))
    assert out4o.dtype == jnp.bfloat16, "out_dtype override not honored"
    assert jnp.allclose(out4o.astype(jnp.float32), ref4b, atol=3e-2), "out_dtype mismatch"

    # ---- non-128-divisible sample size: padded lane-dense path --------------
    Lp, Cp, Sp = 5, 24, 9                                       # N = 120 -> pad 128
    weight_p = trunc_normal(k_w5, (Sp, Cp))
    xp = jax.random.normal(k_x5, (B, Lp, Cp), jnp.float32)
    outp = jax.block_until_ready(position_embedding_3d(xp, weight_p, start=2))
    refp = xp + weight_p[2:2 + Lp][None]
    assert jnp.allclose(outp, refp, atol=1e-6), "padded-path mismatch"

    # ---- multi-row-tile 2D-grid path (forced tiny blocks for coverage) ------
    Lg, Cg, Sg = 32, 128, 40                                    # N = 4096
    weight_g = trunc_normal(jax.random.PRNGKey(11), (Sg, Cg))
    xg = jax.random.normal(jax.random.PRNGKey(12), (B, Lg, Cg), jnp.float32)
    wg = jax.lax.dynamic_slice(weight_g, (4, 0), (Lg, Cg)).reshape(Lg * Cg)
    outg = _broadcast_add_pallas(xg.reshape(B, Lg * Cg), wg, jnp.float32,
                                 max_lanes=128, max_block_bytes=8 * 128 * 4)
    outg = jax.block_until_ready(outg).reshape(B, Lg, Cg)
    refg = xg + weight_g[4:4 + Lg][None]
    assert jnp.allclose(outg, refg, atol=1e-6), "2D-grid path mismatch"

    print("KERNEL_OK")
</pallas_src>

<mosaic_0001>
module attributes {stable_mosaic.version = 11 : i64} {
  func.func @_pos_add_kernel(%arg0: i32, %arg1: memref<1x1x256xf32, #tpu.memory_space<vmem>>, %arg2: memref<1x256xf32, #tpu.memory_space<vmem>>, %arg3: memref<1x1x256xf32, #tpu.memory_space<vmem>>) attributes {dimension_semantics = [#tpu.dimension_semantics<parallel>], iteration_bounds = array<i64: 2>, scalar_prefetch = 0 : i64, scratch_operands = 0 : i64, tpu.core_type = #tpu.core_type<tc>, window_params = [{transform_indices = @transform_0, window_bounds = array<i64: 1, 1, 256>}, {pipeline_mode = #tpu.pipeline_mode<synchronous>, transform_indices = @transform_1, window_bounds = array<i64: 1, 256>}, {transform_indices = @transform_2, window_bounds = array<i64: 1, 1, 256>}]} {
    %c0 = arith.constant 0 : index
    %c0_0 = arith.constant 0 : index
    %0 = vector.load %arg2[%c0, %c0_0] : memref<1x256xf32, #tpu.memory_space<vmem>>, vector<1x256xf32>
    %c0_1 = arith.constant 0 : index
    %c0_2 = arith.constant 0 : index
    %c0_3 = arith.constant 0 : index
    %1 = vector.load %arg1[%c0_1, %c0_2, %c0_3] : memref<1x1x256xf32, #tpu.memory_space<vmem>>, vector<1x1x256xf32>
    %2 = vector.shape_cast %1 : vector<1x1x256xf32> to vector<1x256xf32>
    %3 = arith.addf %2, %0 : vector<1x256xf32>
    %c0_4 = arith.constant 0 : index
    %c0_5 = arith.constant 0 : index
    %c0_6 = arith.constant 0 : index
    %4 = vector.load %arg3[%c0_4, %c0_5, %c0_6] : memref<1x1x256xf32, #tpu.memory_space<vmem>>, vector<1x1x256xf32>
    %5 = vector.shape_cast %4 : vector<1x1x256xf32> to vector<1x256xf32>
    %6 = vector.shape_cast %3 : vector<1x256xf32> to vector<1x1x256xf32>
    tpu.vector_store %arg3[%c0_4, %c0_5, %c0_6], %6 {strides = array<i32>} : memref<1x1x256xf32, #tpu.memory_space<vmem>>, vector<1x1x256xf32>,
    return
  }
  func.func @transform_0(%arg0: i32) -> (i32, i32, i32) {
    %c0_i32 = arith.constant 0 : i32
    %c0_i32_0 = arith.constant 0 : i32
    %c0_i32_1 = arith.constant 0 : i32
    return %arg0, %c0_i32, %c0_i32_0 : i32, i32, i32
  }
  func.func @transform_1(%arg0: i32) -> (i32, i32) {
    %c0_i32 = arith.constant 0 : i32
    %c0_i32_0 = arith.constant 0 : i32
    %c0_i32_1 = arith.constant 0 : i32
    return %c0_i32, %c0_i32_0 : i32, i32
  }
  func.func @transform_2(%arg0: i32) -> (i32, i32, i32) {
    %c0_i32 = arith.constant 0 : i32
    %c0_i32_0 = arith.constant 0 : i32
    %c0_i32_1 = arith.constant 0 : i32
    return %arg0, %c0_i32, %c0_i32_0 : i32, i32, i32
  }
}

</mosaic_0001>

<bundles_post_ra>
// kernel: tpu_custom_call.1
= control target key start
LH: loop header
LB: loop body
LE: loop exit
PB: predicated region body
PF: predicated region fallthrough
CT: control target
= control target key end

     0   :  { %7 = vsyncpa [#allocation3], 0  ;;  %s659_s0 = inlined_call_operand.hbm [shape: f32[2,1,256], index: 0, kind: input, shape index: {}]   ;;  %s660_s1 = inlined_call_operand.hbm [shape: f32[1,256], index: 1, kind: input, shape index: {}]   ;;  %s661_s2 = inlined_call_operand.hbm [shape: f32[2,1,256], index: 2, kind: output, shape index: {}]  }
   0x1   :  { %9 = vsyncpa [#allocation3 + $0x1], 0 }
   0x2   :  { %10 = vsyncpa [#allocation6], 0 }
   0x3   :  { %11 = vsyncpa [#allocation4], 0 }
   0x4   :  { %13 = vsyncpa [#allocation4 + $0x1], 0  ;;  %s493_s9 = smov 0   ;;  %s495_s10 = smov 0  }
   0x5   :  { %s497_s11 = smov 0   ;;  %s499_s12 = smov 0  }
   0x6 LB: > { %s514_s13 = sadd.s32 4294967295, %s473_s12   ;;  %s276_s14 = sadd.s32 4294967294, %s473_s12   ;;  %s473_s12 = sphi %s499_s12, %s684_s12   ;;  %s469_s11 = sphi %s497_s11, %s683_s11   ;;  %s465_s10 = sphi %s495_s10, %s682_s10   ;;  %s461_s9 = sphi %s493_s9, %s681_s9  }
   0x7   : > { %p39_p0 = scmp.ne.s32.totalorder %s465_s10, %s461_s9  ;;  %p662_p1 = scmp.eq.s32.totalorder %s514_s13, 0 }
   0x8   : > { %p90_p3 = scmp.eq.s32.totalorder %s276_s14, 1  ;;  %p277_p5 = scmp.ge.s32.totalorder %s473_s12, 1 }
   0x9   : > { %p523_p4 = por %p662_p1, %p39_p0  ;;  %p97_p7 = scmp.lt.s32.totalorder %s473_s12, 3 }
   0xa   : > { %p528_p6 = por %p90_p3, %p39_p0  ;;  %s475_s18 = smov [#allocation5]  }
   0xb   : > { %s666_s15 = scalar_select %p523_p4, 1, 0 }
   0xc   : > { %s667_s16 = scalar_select %p528_p6, 1, 0 }
   0xd   : > { %p533_p8 = pnand %p277_p5, %p97_p7  ;;  %s110_s19 = sshll.u32 %s475_s18, 4  ;;  %s111_s19 = int_to_ptr.vmem [resolvable:$true] %s110_s19 }
   0xe   : > { %s541_s20 = sadd.s32 1, %s473_s12   ;;  %s26_s24 = sadd.s32 1, %s469_s11 }
   0xf   : > { %s668_s17 = scalar_select %p533_p8, 1, 0 }
  0x10   : > { %p302_p10 = pneg %p533_p8  ;;  %s23_s22 = ssub.s32 %s473_s12, %s541_s20 }
  0x11   : > { %p551_p12 = scmp.eq.s32.totalorder %s23_s22, 0  ;;  %p33_p13 = scmp.ne.s32.totalorder %s469_s11, %s465_s10 }
  0x12   : > { %p545_p11 = pnand %p302_p10, %p662_p1  ;;  %s362_s25 = scalar_lea.vmem %s111_s19, 32 }
  0x13   : > { %p363_p3 = scmp.ne.s32.totalorder %s111_s19, %s362_s25  ;;  %p370_p9 = scmp.lt.s32.totalorder %s111_s19, %s111_s19 }
  0x14   : > { %p353_p0 = pneg %p545_p11  ;;  %p371_p2 = scmp.lt.s32.totalorder %s362_s25, %s362_s25 }
  0x16   : > { %p365_p5 = pnand %p363_p3, %p353_p0  ;;  %p372_p10 = por %p371_p2, %p370_p9 }
  0x18   : > { %p366_p7 = pneg %p365_p5 }
  0x1a   : > { %p373_p1 = pnand %p372_p10, %p366_p7 }
  0x1c   : > { %376 = shalt.err (!%p373_p1)
}
  0x1d   : > { %305 = dma.hbm_to_vmem [thread:$0]  (!%p545_p11), %s660_s1, 32, %s111_s19, [#allocation6]  }
  0x1e   : > { %s568_s28 = scalar_select %p551_p12, %s469_s11, %s26_s24  }
  0x1f   : > { %p34_p1 = scmp.eq.s32.totalorder %s473_s12, 0  ;;  %p671_p2 = scmp.eq.s32.totalorder %s514_s13, 1 }
  0x20   : > { %p315_p0 = scmp.lt.s32.totalorder %s473_s12, 2  ;;  %s121_s30 = sand.u32 1, %s469_s11  }
  0x21   : > { %p576_p9 = por %p671_p2, %p33_p13  ;;  %p35_p3 = por %p34_p1, %p33_p13 }
  0x22   : > { %s280_s3 = sshll.u32 %s121_s30, 1  ;;  %s292_s4 = sshll.u32 %s473_s12, 5 }
  0x23   : > { %s672_s29 = scalar_select %p576_p9, 1, 0 }
  0x24   : > { %s589_s7 = scalar_lea.hbm %s659_s0, %s292_s4  ;;  %s125_s8 = scalar_lea.vmem [#allocation2], %s280_s3 }
  0x25   : > { %s133_s14 = sshll.u32 %s125_s8, 4  ;;  %p591_p11 = pnand %p315_p0, %p35_p3  ;;  %s134_s14 = int_to_ptr.vmem [resolvable:$true] %s133_s14 }
  0x26   : > { %s122_s19 = scalar_lea.sflag [#allocation3], %s121_s30  ;;  %s377_s21 = scalar_lea.hbm %s589_s7, 32 }
  0x27   : > { %p378_p12 = scmp.ne.s32.totalorder %s589_s7, %s377_s21  ;;  %p379_p13 = pneg %p591_p11 }
  0x28   : > { %s382_s24 = scalar_lea.hbm %s659_s0, 64  ;;  %p383_p10 = scmp.lt.s32.totalorder %s589_s7, %s659_s0 }
  0x29   : > { %p380_p5 = pnand %p379_p13, %p378_p12  ;;  %p384_p1 = scmp.lt.s32.totalorder %s382_s24, %s377_s21 }
  0x2b   : > { %p381_p7 = pneg %p380_p5  ;;  %p385_p2 = por %p384_p1, %p383_p10 }
  0x2d   : > { %p386_p0 = pnand %p385_p2, %p381_p7 }
  0x2f   : > { %389 = shalt.err (!%p386_p0)
}
  0x30   : > { %s390_s27 = scalar_lea.vmem %s134_s14, 32  ;;  %s476_s30 = smov [#allocation2]  }
  0x31   : > { %p391_p3 = scmp.ne.s32.totalorder %s134_s14, %s390_s27  ;;  %s395_s3 = sshll.u32 %s476_s30, 4  ;;  %s396_s3 = int_to_ptr.vmem [resolvable:$false] %s395_s3 }
  0x32   : > { %s397_s4 = scalar_lea.vmem %s396_s3, 64  ;;  %p398_p12 = scmp.lt.s32.totalorder %s134_s14, %s396_s3 }
  0x33   : > { %p393_p6 = pnand %p391_p3, %p379_p13  ;;  %p399_p5 = scmp.lt.s32.totalorder %s397_s4, %s390_s27 }
  0x35   : > { %p394_p9 = pneg %p393_p6  ;;  %p400_p4 = por %p399_p5, %p398_p12 }
  0x37   : > { %p401_p8 = pnand %p400_p4, %p394_p9 }
  0x39   : > { %404 = shalt.err (!%p401_p8)
}
  0x3a   : > { %309 = dma.hbm_to_vmem [thread:$0]  (!%p591_p11), %s589_s7, 32, %s134_s14, %s122_s19  }
  0x3b   : > { %p674_p7 = scmp.ne.s32.totalorder %s668_s17, 0 }
  0x3c   : > { %s612_s5 = sand.u32 (!%p674_p7), 1, %s465_s10   ;;  %p675_p6 = scmp.ne.s32.totalorder (!%p674_p7), %s666_s15, 0 }
  0x3d   : > { %142 = sbr.rel (%p674_p7) target bundleno = 95 (0x5f), region = 28  ;;  %s284_s6 = sshll.u32 (!%p674_p7), %s612_s5, 1 }
  0x3e   : > { %s145_s8 = scalar_lea.sflag (!%p674_p7), [#allocation3], %s612_s5  ;;  %s148_s21 = scalar_lea.vmem (!%p674_p7), [#allocation2], %s284_s6 }
  0x42   : > { %448 = dma.done.wait (%p675_p6), %s145_s8, 32  }
  0x43   : > { %450 = vsyncadd (%p675_p6), %s145_s8, 4294967264  ;;  %p676_p4 = scmp.eq.s32.totalorder %s514_s13, 0 }
  0x45   : > { %452 = dma.done.wait (%p676_p4), [#allocation6], 32   ;;  %p677_p8 = pmov %p676_p4 }
  0x46   : > { %v176_v0 = vlaneseq  ;;  %s172_s17 = scalar_lea.vmem [#allocation7], %s284_s6  ;;  %s293_s14 = sshll.u32 %s514_s13, 5  ;;  %v173_v1 = vld [vmem:[#allocation5] sm:$0x3]  ;;  %v174_v2 = vld [vmem:[%s148_s21] sm:$0x3] }
  0x47   : > { %454 = vsyncadd (%p677_p8), [#allocation6], 4294967264  ;;  %s196_s7 = sshll.u32 %s172_s17, 4  ;;  %v175_v3 = vadd.f32 %v174_v2, %v173_v1  ;;  %s194_s19 = scalar_lea.hbm %s661_s2, %s293_s14  ;;  %s197_s7 = int_to_ptr.vmem [resolvable:$true] %s196_s7 }
  0x48   : > { %vm178_vm0 = vcmp.lt.s32.totalorder %v176_v0, 256  ;;  %s182_s22 = scalar_lea.sflag [#allocation4], %s612_s5  ;;  %s405_s23 = scalar_lea.vmem %s197_s7, 32 }
  0x49   : > { %180 = vst.msk [vmem:[%s172_s17] sm:$0x3] %vm178_vm0, %v175_v3  ;;  %p406_p9 = scmp.ne.s32.totalorder %s197_s7, %s405_s23  ;;  %p678_p11 = scmp.ne.s32.totalorder %s672_s29, 0 }
  0x4a   : > { %s477_s24 = smov [#allocation7]  }
  0x4b   : > { %p407_p13 = pnand %p406_p9, %p678_p11  ;;  %s409_s25 = sshll.u32 %s477_s24, 4  ;;  %s410_s25 = int_to_ptr.vmem [resolvable:$false] %s409_s25 }
  0x4c   : > { %s411_s13 = scalar_lea.vmem %s410_s25, 64  ;;  %p412_p1 = scmp.lt.s32.totalorder %s197_s7, %s410_s25 }
  0x4d   : > { %p408_p10 = pneg %p407_p13  ;;  %p413_p2 = scmp.lt.s32.totalorder %s411_s13, %s405_s23 }
  0x4f   : > { %p414_p0 = por %p413_p2, %p412_p1 }
  0x51   : > { %p415_p3 = pnand %p414_p0, %p408_p10 }
  0x53   : > { %418 = shalt.err (!%p415_p3)
}
  0x54   : > { %s419_s26 = scalar_lea.hbm %s194_s19, 32  ;;  %s423_s3 = scalar_lea.hbm %s661_s2, 64 }
  0x55   : > { %p420_p12 = scmp.ne.s32.totalorder %s194_s19, %s419_s26  ;;  %p424_p6 = scmp.lt.s32.totalorder %s194_s19, %s661_s2 }
  0x56   : > { %p425_p4 = scmp.lt.s32.totalorder %s423_s3, %s419_s26 }
  0x57   : > { %p421_p5 = pnand %p420_p12, %p678_p11 }
  0x58   : > { %p426_p8 = por %p425_p4, %p424_p6 }
  0x59   : > { %p422_p7 = pneg %p421_p5 }
  0x5b   : > { %p427_p9 = pnand %p426_p8, %p422_p7 }
  0x5d   : > { %430 = shalt.err (!%p427_p9)
}
  0x5e   : > { %300 = dma.vmem_to_hbm [thread:$0]  (%p678_p11), %s197_s7, 32, %s194_s19, %s182_s22  }
  0x5f PF: > { %s208_s6 = sand.u32 1, %s461_s9   ;;  %p679_p13 = scmp.ne.s32.totalorder %s667_s16, 0 }
  0x60   : > { %p680_p10 = scmp.ge.s32.totalorder %s473_s12, 2  ;;  %s209_s8 = scalar_lea.sflag [#allocation4], %s208_s6 }
  0x62   : > { %p311_p1 = pnand %p680_p10, %p679_p13 }
  0x64   : > { %p312_p2 = pneg %p311_p1 }
  0x66   : > { %456 = dma.done.wait (%p312_p2), %s209_s8, 32  }
  0x67   : > { %458 = vsyncadd (%p312_p2), %s209_s8, 4294967264  ;;  %p16_p0 = scmp.ge.s32.totalorder %s541_s20, 4   ;;  %s681_s9 = smov %s465_s10 }
  0x68   : > { %s682_s10 = smov %s469_s11  ;;  %s683_s11 = smov %s568_s28 }
  0x69   : > { %s684_s12 = smov %s541_s20  ;;  %18 = sbr.rel (!%p16_p0) target bundleno = 6 (0x6), region = 77 }
  0x6e   :  { %214 = vsyncpa [#allocation3], 1 }
  0x6f   :  { %216 = vsyncpa [#allocation3 + $0x1], 1 }
  0x70   :  { %217 = vsyncpa [#allocation6], 1 }
  0x71   :  { %218 = vsyncpa [#allocation4], 1 }
  0x72   :  { %220 = vsyncpa [#allocation4 + $0x1], 1 }

</bundles_post_ra>
